<compile_context>
chip_gen: v7x
topology: tpu7x:2x2x1
jax: 0.10.0
libtpu: 0.0.40
codegen_flags: <defaults>
</compile_context>

<pallas_src>
import jax
import jax.numpy as jnp
from jax.experimental import pallas as pl
from jax.experimental.pallas import tpu as pltpu

# fc layer sizes: 22 -> 32 -> 64 -> 128 -> 256 -> 512 -> 256 -> 64 -> 16 -> 1
DIMS = [22, 32, 64, 128, 256, 512, 256, 64, 16, 1]
NUM_LAYERS = len(DIMS) - 1      # 9 linear layers
NUM_BN = NUM_LAYERS - 1         # bn after fc1..fc8 (not after fc9)
BN_EPS = 1e-5


def _round_up(n, m):
    return ((n + m - 1) // m) * m


# ---- packed bias layout: lane-aligned (128) offsets ------------------------
BOFF = []
_off = 0
for _i in range(NUM_LAYERS):
    BOFF.append(_off)
    _off += _round_up(DIMS[_i + 1], 128)
BPACK = _off                    # 1792

# ---- packed weight-slab layout ----------------------------------------------
# Layers 0..7 stored as (din, dout); layer 8 stored TRANSPOSED as (1, 16) so the
# final matmul can contract last-dims (q@k^T pattern) and emit a (1, TB) row.
_W_STORE_ROWS = [DIMS[i] for i in range(NUM_LAYERS - 1)] + [1]
_W_STORE_COLS = [DIMS[i + 1] for i in range(NUM_LAYERS - 1)] + [DIMS[-2]]
WOFF = []
_off = 0
for _r in _W_STORE_ROWS:
    WOFF.append(_off)
    _off += _round_up(_r, 16)   # 16-row alignment keeps bf16 sublane packing clean
WROWS = _off                    # 1360
WCOLS = max(_W_STORE_COLS)      # 512
del _off, _i, _r

TOTAL_MACS = sum(DIMS[i] * DIMS[i + 1] for i in range(NUM_LAYERS))


def _mlp_kernel(x_ref, w_ref, b_ref, out_ref):
    """One batch tile of the whole fused MLP.

    x_ref:   (TB, 22)  f32
    w_ref:   (WROWS, WCOLS) bf16  -- all BN-folded weights, VMEM-resident
    b_ref:   (1, BPACK) f32       -- all fused biases, VMEM-resident
    out_ref: (1, TB)   f32        -- lane-dense sigmoid outputs for this tile
    """
    h = x_ref[...].astype(jnp.bfloat16)                       # (TB, 22) bf16
    for i in range(NUM_LAYERS - 1):
        din, dout = DIMS[i], DIMS[i + 1]
        w = w_ref[WOFF[i]:WOFF[i] + din, :dout]                # (din, dout) bf16
        b = b_ref[:, BOFF[i]:BOFF[i] + dout]                   # (1, dout) f32
        acc = jnp.dot(h, w, preferred_element_type=jnp.float32)
        # bias + ReLU in f32, then store the inter-layer activation as bf16
        # (dropout = identity in eval mode).
        h = jnp.maximum(acc + b, 0.0).astype(jnp.bfloat16)     # (TB, dout) bf16

    # Final layer: weight stored transposed (1, 16); contract last dims of both
    # operands (same pattern as q @ k^T) -> lane-dense (1, TB) logits row.
    w9t = w_ref[WOFF[-1]:WOFF[-1] + 1, :DIMS[-2]]              # (1, 16) bf16
    b9 = b_ref[:, BOFF[-1]:BOFF[-1] + 1]                       # (1, 1) f32
    logits = jax.lax.dot_general(
        w9t, h, dimension_numbers=(((1,), (1,)), ((), ())),
        preferred_element_type=jnp.float32)                    # (1, TB) f32
    z = logits + b9
    out_ref[...] = 1.0 / (1.0 + jnp.exp(-z))                   # exact sigmoid


def _pick_tb(batch):
    """Batch tile: tight tile for small batches (latency path); up to 1024 rows
    for large batches while keeping >= 2 grid steps for v7x megacore."""
    if batch <= 256:
        return max(8, _round_up(batch, 8))
    tb = 1024
    while tb > 256 and -(-batch // tb) < 2:
        tb //= 2
    return tb


@jax.jit
def modified_ffnn_net1_forward(x, w_slab, bias_pack):
    """x: (B, 22) f32 -> (B, 1) f32 sigmoid outputs."""
    batch = x.shape[0]
    tb = _pick_tb(batch)
    grid_n = -(-batch // tb)
    pad_b = grid_n * tb
    if pad_b != batch:
        x = jnp.pad(x, ((0, pad_b - batch), (0, 0)))

    x_spec = pl.BlockSpec((tb, DIMS[0]), lambda i: (i, 0))
    w_spec = pl.BlockSpec((WROWS, WCOLS), lambda i: (0, 0))       # VMEM-resident
    b_spec = pl.BlockSpec((1, BPACK), lambda i: (0, 0))           # VMEM-resident
    # Lane-dense output: (grid, 1, TB); leading dim squeezed inside the kernel.
    out_spec = pl.BlockSpec((None, 1, tb), lambda i: (i, 0, 0))

    cost = pl.CostEstimate(
        flops=2 * pad_b * TOTAL_MACS,
        transcendentals=pad_b,
        bytes_accessed=pad_b * DIMS[0] * 4 + pad_b * 4
        + WROWS * WCOLS * 2 + BPACK * 4,
    )

    out = pl.pallas_call(
        _mlp_kernel,
        out_shape=jax.ShapeDtypeStruct((grid_n, 1, tb), jnp.float32),
        grid=(grid_n,),
        in_specs=[x_spec, w_spec, b_spec],
        out_specs=out_spec,
        compiler_params=pltpu.CompilerParams(
            dimension_semantics=("parallel",)),
        cost_estimate=cost,
    )(x, w_slab, bias_pack)

    return out.reshape(pad_b, 1)[:batch]


def init_raw_params(key):
    """He-style weight init + non-trivial BatchNorm eval statistics so the
    BN-folding algebra is actually exercised by the correctness check."""
    raw = {"w": [], "b": [], "gamma": [], "beta": [], "mean": [], "var": []}
    for i in range(NUM_LAYERS):
        fan_in, fan_out = DIMS[i], DIMS[i + 1]
        key, kw, kb = jax.random.split(key, 3)
        raw["w"].append(jax.random.normal(kw, (fan_in, fan_out), jnp.float32)
                        * jnp.sqrt(2.0 / fan_in))
        raw["b"].append(jax.random.normal(kb, (1, fan_out), jnp.float32) * 0.05)
    for i in range(NUM_BN):
        n = DIMS[i + 1]
        key, k1, k2, k3, k4 = jax.random.split(key, 5)
        raw["gamma"].append(jax.random.uniform(k1, (1, n), jnp.float32, 0.8, 1.2))
        raw["beta"].append(jax.random.normal(k2, (1, n), jnp.float32) * 0.05)
        raw["mean"].append(jax.random.normal(k3, (1, n), jnp.float32) * 0.05)
        raw["var"].append(jax.random.uniform(k4, (1, n), jnp.float32, 0.8, 1.2))
    return raw


def fuse_params(raw):
    """Fold BN (eval mode) into each Linear; pack all weights into one bf16 slab
    (last layer stored transposed) and all biases into one f32 vector."""
    w_slab = jnp.zeros((WROWS, WCOLS), jnp.float32)
    bias_pack = jnp.zeros((1, BPACK), jnp.float32)
    for i in range(NUM_LAYERS):
        w = raw["w"][i]
        b = raw["b"][i]
        if i < NUM_BN:
            s = raw["gamma"][i] / jnp.sqrt(raw["var"][i] + BN_EPS)   # (1, n)
            t = raw["beta"][i] - raw["mean"][i] * s
            w = w * s                 # scale output columns
            b = b * s + t
        stored = w if i < NUM_LAYERS - 1 else w.T     # last layer: (1, 16)
        r, c = stored.shape
        w_slab = w_slab.at[WOFF[i]:WOFF[i] + r, :c].set(stored)
        bias_pack = bias_pack.at[:, BOFF[i]:BOFF[i] + DIMS[i + 1]].set(b)
    return w_slab.astype(jnp.bfloat16), bias_pack


def reference_forward_f32(x, raw):
    """Plain-JAX f32 replica of ModifiedFfnnNet1.forward (eval mode)."""
    h = x
    for i in range(NUM_BN):
        h = h @ raw["w"][i] + raw["b"][i]
        s = raw["gamma"][i] / jnp.sqrt(raw["var"][i] + BN_EPS)
        h = (h - raw["mean"][i]) * s + raw["beta"][i]
        h = jnp.maximum(h, 0.0)
    logits = h @ raw["w"][-1] + raw["b"][-1]
    return jax.nn.sigmoid(logits)


# TODO(synk): conv1 (Conv1d/BN/ReLU/MaxPool/Dropout) is constructed in __init__
# but never used in forward(), so it is intentionally not implemented.

if __name__ == "__main__":
    key = jax.random.PRNGKey(0)
    key, kp = jax.random.split(key)
    raw = init_raw_params(kp)
    w_slab, bias_pack = fuse_params(raw)

    # small latency path (TB=8), multi-tile TB=256 path, and large TB=1024 path
    for batch in (2, 512, 2048):
        key, kx = jax.random.split(key)
        x = jax.random.normal(kx, (batch, DIMS[0]), jnp.float32)

        out = jax.block_until_ready(
            modified_ffnn_net1_forward(x, w_slab, bias_pack))
        ref = reference_forward_f32(x, raw)

        assert out.shape == (batch, 1)
        err = float(jnp.max(jnp.abs(out - ref)))
        # bf16 matmuls vs exact f32 reference (exact sigmoid now).
        assert err < 1.5e-2, f"batch={batch}: max abs err {err}"

    print("KERNEL_OK")
</pallas_src>

<mosaic_0001>
module attributes {stable_mosaic.version = 11 : i64} {
  func.func @_mlp_kernel(%arg0: i32, %arg1: memref<8x22xf32, #tpu.memory_space<vmem>>, %arg2: memref<1360x512xbf16, #tpu.memory_space<vmem>>, %arg3: memref<1x1792xf32, #tpu.memory_space<vmem>>, %arg4: memref<1x1x8xf32, #tpu.memory_space<vmem>>) attributes {dimension_semantics = [#tpu.dimension_semantics<parallel>], iteration_bounds = array<i64: 1>, scalar_prefetch = 0 : i64, scratch_operands = 0 : i64, tpu.core_type = #tpu.core_type<tc>, window_params = [{transform_indices = @transform_0, window_bounds = array<i64: 8, 22>}, {pipeline_mode = #tpu.pipeline_mode<synchronous>, transform_indices = @transform_1, window_bounds = array<i64: 1360, 512>}, {pipeline_mode = #tpu.pipeline_mode<synchronous>, transform_indices = @transform_2, window_bounds = array<i64: 1, 1792>}, {transform_indices = @transform_3, window_bounds = array<i64: 1, 1, 8>}]} {
    %c0 = arith.constant 0 : index
    %c0_0 = arith.constant 0 : index
    %0 = vector.load %arg1[%c0, %c0_0] : memref<8x22xf32, #tpu.memory_space<vmem>>, vector<8x22xf32>
    %1 = arith.truncf %0 : vector<8x22xf32> to vector<8x22xbf16>
    %c0_1 = arith.constant 0 : index
    %c0_2 = arith.constant 0 : index
    %2 = vector.load %arg2[%c0_1, %c0_2] : memref<1360x512xbf16, #tpu.memory_space<vmem>>, vector<22x32xbf16>
    %c0_3 = arith.constant 0 : index
    %c0_4 = arith.constant 0 : index
    %3 = vector.load %arg3[%c0_3, %c0_4] : memref<1x1792xf32, #tpu.memory_space<vmem>>, vector<1x32xf32>
    %cst = arith.constant dense<0.000000e+00> : vector<8x32xf32>
    %4 = tpu.matmul %1, %2, %cst {dimension_numbers = #tpu.dot_dimension_numbers<[1], [0], [0], [1], [0, 0, 1, 1], [], []>} : vector<8x22xbf16>, vector<22x32xbf16>, vector<8x32xf32> -> vector<8x32xf32>
    %5 = vector.broadcast %3 : vector<1x32xf32> to vector<8x32xf32>
    %6 = arith.addf %4, %5 : vector<8x32xf32>
    %cst_5 = arith.constant 0.000000e+00 : f32
    %7 = vector.broadcast %cst_5 : f32 to vector<8x32xf32>
    %8 = arith.maximumf %6, %7 : vector<8x32xf32>
    %9 = arith.truncf %8 : vector<8x32xf32> to vector<8x32xbf16>
    %c32 = arith.constant 32 : index
    %c0_6 = arith.constant 0 : index
    %10 = vector.load %arg2[%c32, %c0_6] : memref<1360x512xbf16, #tpu.memory_space<vmem>>, vector<32x64xbf16>
    %c0_7 = arith.constant 0 : index
    %c128 = arith.constant 128 : index
    %11 = vector.load %arg3[%c0_7, %c128] : memref<1x1792xf32, #tpu.memory_space<vmem>>, vector<1x64xf32>
    %cst_8 = arith.constant dense<0.000000e+00> : vector<8x64xf32>
    %12 = tpu.matmul %9, %10, %cst_8 {dimension_numbers = #tpu.dot_dimension_numbers<[1], [0], [0], [1], [0, 0, 1, 1], [], []>} : vector<8x32xbf16>, vector<32x64xbf16>, vector<8x64xf32> -> vector<8x64xf32>
    %13 = vector.broadcast %11 : vector<1x64xf32> to vector<8x64xf32>
    %14 = arith.addf %12, %13 : vector<8x64xf32>
    %cst_9 = arith.constant 0.000000e+00 : f32
    %15 = vector.broadcast %cst_9 : f32 to vector<8x64xf32>
    %16 = arith.maximumf %14, %15 : vector<8x64xf32>
    %17 = arith.truncf %16 : vector<8x64xf32> to vector<8x64xbf16>
    %c64 = arith.constant 64 : index
    %c0_10 = arith.constant 0 : index
    %18 = vector.load %arg2[%c64, %c0_10] : memref<1360x512xbf16, #tpu.memory_space<vmem>>, vector<64x128xbf16>
    %c0_11 = arith.constant 0 : index
    %c256 = arith.constant 256 : index
    %19 = vector.load %arg3[%c0_11, %c256] : memref<1x1792xf32, #tpu.memory_space<vmem>>, vector<1x128xf32>
    %cst_12 = arith.constant dense<0.000000e+00> : vector<8x128xf32>
    %20 = tpu.matmul %17, %18, %cst_12 {dimension_numbers = #tpu.dot_dimension_numbers<[1], [0], [0], [1], [0, 0, 1, 1], [], []>} : vector<8x64xbf16>, vector<64x128xbf16>, vector<8x128xf32> -> vector<8x128xf32>
    %21 = vector.broadcast %19 : vector<1x128xf32> to vector<8x128xf32>
    %22 = arith.addf %20, %21 : vector<8x128xf32>
    %cst_13 = arith.constant 0.000000e+00 : f32
    %23 = vector.broadcast %cst_13 : f32 to vector<8x128xf32>
    %24 = arith.maximumf %22, %23 : vector<8x128xf32>
    %25 = arith.truncf %24 : vector<8x128xf32> to vector<8x128xbf16>
    %c128_14 = arith.constant 128 : index
    %c0_15 = arith.constant 0 : index
    %26 = vector.load %arg2[%c128_14, %c0_15] : memref<1360x512xbf16, #tpu.memory_space<vmem>>, vector<128x256xbf16>
    %c0_16 = arith.constant 0 : index
    %c384 = arith.constant 384 : index
    %27 = vector.load %arg3[%c0_16, %c384] : memref<1x1792xf32, #tpu.memory_space<vmem>>, vector<1x256xf32>
    %cst_17 = arith.constant dense<0.000000e+00> : vector<8x256xf32>
    %28 = tpu.matmul %25, %26, %cst_17 {dimension_numbers = #tpu.dot_dimension_numbers<[1], [0], [0], [1], [0, 0, 1, 1], [], []>} : vector<8x128xbf16>, vector<128x256xbf16>, vector<8x256xf32> -> vector<8x256xf32>
    %29 = vector.broadcast %27 : vector<1x256xf32> to vector<8x256xf32>
    %30 = arith.addf %28, %29 : vector<8x256xf32>
    %cst_18 = arith.constant 0.000000e+00 : f32
    %31 = vector.broadcast %cst_18 : f32 to vector<8x256xf32>
    %32 = arith.maximumf %30, %31 : vector<8x256xf32>
    %33 = arith.truncf %32 : vector<8x256xf32> to vector<8x256xbf16>
    %c256_19 = arith.constant 256 : index
    %c0_20 = arith.constant 0 : index
    %34 = vector.load %arg2[%c256_19, %c0_20] : memref<1360x512xbf16, #tpu.memory_space<vmem>>, vector<256x512xbf16>
    %c0_21 = arith.constant 0 : index
    %c640 = arith.constant 640 : index
    %35 = vector.load %arg3[%c0_21, %c640] : memref<1x1792xf32, #tpu.memory_space<vmem>>, vector<1x512xf32>
    %cst_22 = arith.constant dense<0.000000e+00> : vector<8x512xf32>
    %36 = tpu.matmul %33, %34, %cst_22 {dimension_numbers = #tpu.dot_dimension_numbers<[1], [0], [0], [1], [0, 0, 1, 1], [], []>} : vector<8x256xbf16>, vector<256x512xbf16>, vector<8x512xf32> -> vector<8x512xf32>
    %37 = vector.broadcast %35 : vector<1x512xf32> to vector<8x512xf32>
    %38 = arith.addf %36, %37 : vector<8x512xf32>
    %cst_23 = arith.constant 0.000000e+00 : f32
    %39 = vector.broadcast %cst_23 : f32 to vector<8x512xf32>
    %40 = arith.maximumf %38, %39 : vector<8x512xf32>
    %41 = arith.truncf %40 : vector<8x512xf32> to vector<8x512xbf16>
    %c512 = arith.constant 512 : index
    %c0_24 = arith.constant 0 : index
    %42 = vector.load %arg2[%c512, %c0_24] : memref<1360x512xbf16, #tpu.memory_space<vmem>>, vector<512x256xbf16>
    %c0_25 = arith.constant 0 : index
    %c1152 = arith.constant 1152 : index
    %43 = vector.load %arg3[%c0_25, %c1152] : memref<1x1792xf32, #tpu.memory_space<vmem>>, vector<1x256xf32>
    %cst_26 = arith.constant dense<0.000000e+00> : vector<8x256xf32>
    %44 = tpu.matmul %41, %42, %cst_26 {dimension_numbers = #tpu.dot_dimension_numbers<[1], [0], [0], [1], [0, 0, 1, 1], [], []>} : vector<8x512xbf16>, vector<512x256xbf16>, vector<8x256xf32> -> vector<8x256xf32>
    %45 = vector.broadcast %43 : vector<1x256xf32> to vector<8x256xf32>
    %46 = arith.addf %44, %45 : vector<8x256xf32>
    %cst_27 = arith.constant 0.000000e+00 : f32
    %47 = vector.broadcast %cst_27 : f32 to vector<8x256xf32>
    %48 = arith.maximumf %46, %47 : vector<8x256xf32>
    %49 = arith.truncf %48 : vector<8x256xf32> to vector<8x256xbf16>
    %c1024 = arith.constant 1024 : index
    %c0_28 = arith.constant 0 : index
    %50 = vector.load %arg2[%c1024, %c0_28] : memref<1360x512xbf16, #tpu.memory_space<vmem>>, vector<256x64xbf16>
    %c0_29 = arith.constant 0 : index
    %c1408 = arith.constant 1408 : index
    %51 = vector.load %arg3[%c0_29, %c1408] : memref<1x1792xf32, #tpu.memory_space<vmem>>, vector<1x64xf32>
    %cst_30 = arith.constant dense<0.000000e+00> : vector<8x64xf32>
    %52 = tpu.matmul %49, %50, %cst_30 {dimension_numbers = #tpu.dot_dimension_numbers<[1], [0], [0], [1], [0, 0, 1, 1], [], []>} : vector<8x256xbf16>, vector<256x64xbf16>, vector<8x64xf32> -> vector<8x64xf32>
    %53 = vector.broadcast %51 : vector<1x64xf32> to vector<8x64xf32>
    %54 = arith.addf %52, %53 : vector<8x64xf32>
    %cst_31 = arith.constant 0.000000e+00 : f32
    %55 = vector.broadcast %cst_31 : f32 to vector<8x64xf32>
    %56 = arith.maximumf %54, %55 : vector<8x64xf32>
    %57 = arith.truncf %56 : vector<8x64xf32> to vector<8x64xbf16>
    %c1280 = arith.constant 1280 : index
    %c0_32 = arith.constant 0 : index
    %58 = vector.load %arg2[%c1280, %c0_32] : memref<1360x512xbf16, #tpu.memory_space<vmem>>, vector<64x16xbf16>
    %c0_33 = arith.constant 0 : index
    %c1536 = arith.constant 1536 : index
    %59 = vector.load %arg3[%c0_33, %c1536] : memref<1x1792xf32, #tpu.memory_space<vmem>>, vector<1x16xf32>
    %cst_34 = arith.constant dense<0.000000e+00> : vector<8x16xf32>
    %60 = tpu.matmul %57, %58, %cst_34 {dimension_numbers = #tpu.dot_dimension_numbers<[1], [0], [0], [1], [0, 0, 1, 1], [], []>} : vector<8x64xbf16>, vector<64x16xbf16>, vector<8x16xf32> -> vector<8x16xf32>
    %61 = vector.broadcast %59 : vector<1x16xf32> to vector<8x16xf32>
    %62 = arith.addf %60, %61 : vector<8x16xf32>
    %cst_35 = arith.constant 0.000000e+00 : f32
    %63 = vector.broadcast %cst_35 : f32 to vector<8x16xf32>
    %64 = arith.maximumf %62, %63 : vector<8x16xf32>
    %65 = arith.truncf %64 : vector<8x16xf32> to vector<8x16xbf16>
    %c1344 = arith.constant 1344 : index
    %c0_36 = arith.constant 0 : index
    %66 = vector.load %arg2[%c1344, %c0_36] : memref<1360x512xbf16, #tpu.memory_space<vmem>>, vector<1x16xbf16>
    %c0_37 = arith.constant 0 : index
    %c1664 = arith.constant 1664 : index
    %67 = vector.load %arg3[%c0_37, %c1664] : memref<1x1792xf32, #tpu.memory_space<vmem>>, vector<1x1xf32>
    %cst_38 = arith.constant dense<0.000000e+00> : vector<1x8xf32>
    %68 = tpu.matmul %66, %65, %cst_38 {dimension_numbers = #tpu.dot_dimension_numbers<[1], [1], [0], [0], [0, 0, 1, 0], [], []>} : vector<1x16xbf16>, vector<8x16xbf16>, vector<1x8xf32> -> vector<1x8xf32>
    %69 = vector.broadcast %67 : vector<1x1xf32> to vector<1x8xf32>
    %70 = arith.addf %68, %69 : vector<1x8xf32>
    %cst_39 = arith.constant 0.000000e+00 : f32
    %71 = vector.broadcast %cst_39 : f32 to vector<1x8xf32>
    %72 = arith.subf %71, %70 : vector<1x8xf32>
    %73 = math.exp %72 : vector<1x8xf32>
    %cst_40 = arith.constant 1.000000e+00 : f32
    %74 = vector.broadcast %cst_40 : f32 to vector<1x8xf32>
    %75 = arith.addf %74, %73 : vector<1x8xf32>
    %cst_41 = arith.constant 1.000000e+00 : f32
    %76 = vector.broadcast %cst_41 : f32 to vector<1x8xf32>
    %77 = arith.divf %76, %75 : vector<1x8xf32>
    %c0_42 = arith.constant 0 : index
    %c0_43 = arith.constant 0 : index
    %c0_44 = arith.constant 0 : index
    %78 = vector.load %arg4[%c0_42, %c0_43, %c0_44] : memref<1x1x8xf32, #tpu.memory_space<vmem>>, vector<1x1x8xf32>
    %79 = vector.shape_cast %78 : vector<1x1x8xf32> to vector<1x8xf32>
    %80 = vector.shape_cast %77 : vector<1x8xf32> to vector<1x1x8xf32>
    tpu.vector_store %arg4[%c0_42, %c0_43, %c0_44], %80 {strides = array<i32>} : memref<1x1x8xf32, #tpu.memory_space<vmem>>, vector<1x1x8xf32>,
    return
  }
  func.func @transform_0(%arg0: i32) -> (i32, i32) {
    %c0_i32 = arith.constant 0 : i32
    %c0_i32_0 = arith.constant 0 : i32
    return %arg0, %c0_i32 : i32, i32
  }
  func.func @transform_1(%arg0: i32) -> (i32, i32) {
    %c0_i32 = arith.constant 0 : i32
    %c0_i32_0 = arith.constant 0 : i32
    %c0_i32_1 = arith.constant 0 : i32
    return %c0_i32, %c0_i32_0 : i32, i32
  }
  func.func @transform_2(%arg0: i32) -> (i32, i32) {
    %c0_i32 = arith.constant 0 : i32
    %c0_i32_0 = arith.constant 0 : i32
    %c0_i32_1 = arith.constant 0 : i32
    return %c0_i32, %c0_i32_0 : i32, i32
  }
  func.func @transform_3(%arg0: i32) -> (i32, i32, i32) {
    %c0_i32 = arith.constant 0 : i32
    %c0_i32_0 = arith.constant 0 : i32
    %c0_i32_1 = arith.constant 0 : i32
    return %arg0, %c0_i32, %c0_i32_0 : i32, i32, i32
  }
}

</mosaic_0001>

<bundles_post_ra>
// kernel: modified_ffnn_net1_forward.1
= control target key start
LH: loop header
LB: loop body
LE: loop exit
PB: predicated region body
PF: predicated region fallthrough
CT: control target
= control target key end

     0   :  { %8 = vsyncpa [#allocation3], 0  ;;  %s2416_s0 = inlined_call_operand.vmem [shape: f32[8,22], index: 0, kind: input, shape index: {}]   ;;  %s2417_s1 = inlined_call_operand.hbm [shape: bf16[1360,512], index: 1, kind: input, shape index: {}]   ;;  %s2418_s2 = inlined_call_operand.hbm [shape: f32[1,1792], index: 2, kind: input, shape index: {}]   ;;  %s2419_s3 = inlined_call_operand.vmem [shape: f32[1,1,8], index: 3, kind: output, shape index: {}]  }
   0x1   :  { %9 = vsyncpa [#allocation5], 0  ;;  %s2308_s12 = smov [#allocation2]   ;;  %s2260_s16 = scalar_lea.hbm %s2417_s1, 43520 }
   0x2   :  { %s17_s13 = sshll.u32 %s2308_s12, 4  ;;  %p2261_p0 = scmp.ne.s32.totalorder %s2417_s1, %s2260_s16  ;;  %s18_s13 = int_to_ptr.vmem [resolvable:$true] %s17_s13 }
   0x3   :  { %p2264_p1 = scmp.lt.u32.totalorder %s2260_s16, %s2417_s1 }
   0x5   :  { %p2266_p2 = pnand %p2264_p1, %p2261_p0 }
   0x7   :  { %2269 = shalt.err (!%p2266_p2)
}
   0x8   :  { %s2270_s21 = scalar_lea.vmem %s18_s13, 43520  ;;  %p2275_p4 = scmp.lt.s32.totalorder %s18_s13, %s18_s13 }
   0x9   :  { %p2271_p3 = scmp.ne.s32.totalorder %s18_s13, %s2270_s21  ;;  %p2276_p5 = scmp.lt.s32.totalorder %s2270_s21, %s2270_s21 }
   0xb   :  { %p2277_p6 = por %p2276_p5, %p2275_p4 }
   0xd   :  { %p2278_p7 = pnand %p2277_p6, %p2271_p3 }
   0xf   :  { %2281 = shalt.err (!%p2278_p7)
}
  0x10   :  { %s2309_s22 = smov 256   ;;  %s2310_s23 = smov 16  }
  0x11   :  { %23 = dma.hbm_to_vmem [thread:$0]  %s2417_s1, 43520, %s18_s13, [#allocation3], %s2309_s22, %s2309_s22, %s2310_s23  }
  0x12   :  { %s2311_s26 = smov [#allocation4]   ;;  %s2282_s30 = scalar_lea.hbm %s2418_s2, 224 }
  0x13   :  { %s30_s27 = sshll.u32 %s2311_s26, 4  ;;  %p2283_p8 = scmp.ne.s32.totalorder %s2418_s2, %s2282_s30  ;;  %s31_s27 = int_to_ptr.vmem [resolvable:$true] %s30_s27 }
  0x14   :  { %p2286_p9 = scmp.lt.u32.totalorder %s2282_s30, %s2418_s2 }
  0x16   :  { %p2288_p10 = pnand %p2286_p9, %p2283_p8 }
  0x18   :  { %2291 = shalt.err (!%p2288_p10)
}
  0x19   :  { %s2292_s8 = scalar_lea.vmem %s31_s27, 224  ;;  %p2297_p12 = scmp.lt.s32.totalorder %s31_s27, %s31_s27 }
  0x1a   :  { %p2293_p11 = scmp.ne.s32.totalorder %s31_s27, %s2292_s8  ;;  %p2298_p13 = scmp.lt.s32.totalorder %s2292_s8, %s2292_s8 }
  0x1c   :  { %p2299_p0 = por %p2298_p13, %p2297_p12 }
  0x1e   :  { %p2300_p1 = pnand %p2299_p0, %p2293_p11 }
  0x20   :  { %2303 = shalt.err (!%p2300_p1)
}
  0x21   :  { %33 = dma.hbm_to_vmem [thread:$0]  %s2418_s2, 224, %s31_s27, [#allocation5]  }
  0x22   :  { %2304 = dma.done.wait [#allocation3], 43520  }
  0x23   :  { %2305 = vsyncadd [#allocation3], 4294923776 }
  0x24   :  { %2306 = dma.done.wait [#allocation5], 224  }
  0x25   :  { %2307 = vsyncadd [#allocation5], 4294967072  ;;  %v2312_v0 = vmov 0.0   ;;  %vm2313_vm0 = vmmov 0   ;;  %vm66_vm1 = vcmask 1042432   ;;  %v41_v3 = vld [vmem:[%s2416_s0] sm:$0xff] }
  0x26   :  { %1952 = vmatprep.subr.bf16.mxu1 %v2312_v0  ;;  %1956 = vmatprep.mubr.msk.bf16.mxu1 %vm2313_vm0, %v2312_v0  ;;  %v2012_v1 = vld [vmem:[#allocation2] ss:$16 sps:$4 sm:$0xff]   ;;  %v42_v5 = vpack.c.bf16 %v41_v3, %v41_v3  ;;  %vm62_vm2 = vcmask 179200   ;;  %vm135_vm3 = vcmask 261120   ;;  %v2022_v20 = vld [vmem:[#allocation2 + $0x104] ss:$16 sps:$4 sm:$0xff]  }
  0x27   :  { %v2013_v2 = vld [vmem:[#allocation2 + $0x20] ss:$0 sps:$4 sm:$0x77]   ;;  %1953 = vmatpush3.bf16.msra.mxu1 %v2012_v1  ;;  %v1734_v21 = vld [vmem:[#allocation4 + $0x1] ss:$0 sm:$0xff]  ;;  %vm220_vm4 = vcmask 523264  }
  0x28   :  { %1954 = vmatprep.subr.bf16.mxu1 %v2312_v0  ;;  %v68_v4 = vsel %vm66_vm1, %v2013_v2, 0  ;;  %v2014_v6 = vld [vmem:[#allocation2 + $0x40] ss:$16 sps:$4 sm:$0xff]   ;;  %v2025_v30 = vld [vmem:[#allocation2 + $0x124] ss:$16 sps:$4 sm:$0xff]   ;;  %v2314_v44 = vmov 0  }
  0x29   :  { %v2015_v7 = vld [vmem:[#allocation2 + $0x60] ss:$16 sps:$4 sm:$0xff]   ;;  %v2028_v32 = vld [vmem:[#allocation2 + $0x144] ss:$16 sps:$4 sm:$0xff]   ;;  %2011 = vset.pattern.permute.xlu0 %v2314_v44  ;;  %v2048_v46 = vld [vmem:[#allocation2 + $0x20c] ss:$16 sps:$4 sm:$0xff]  }
  0x2a   :  { %v1730_v8 = vld [vmem:[#allocation4] ss:$0 sm:$0xff]  ;;  %v2031_v34 = vld [vmem:[#allocation2 + $0x164] ss:$16 sps:$4 sm:$0xff]   ;;  %vm1669_vm5 = vcmask 130048   ;;  %vm1722_vm6 = vcmask 57344  }
  0x2b   :  { %1955 = vmatpush3.bf16.msra.mxu1 %v68_v4  ;;  %v2016_v15 = vld [vmem:[#allocation2 + $0x80] ss:$16 sps:$4 sm:$0xff]   ;;  %v2034_v36 = vld [vmem:[#allocation2 + $0x184] ss:$16 sps:$4 sm:$0xff]  }
  0x2c   :  { %1960 = vmatprep.subr.bf16.mxu1 %v2312_v0  ;;  %v2017_v17 = vld [vmem:[#allocation2 + $0xa0] ss:$16 sps:$4 sm:$0xff]   ;;  %v2037_v38 = vld [vmem:[#allocation2 + $0x1a4] ss:$16 sps:$4 sm:$0xff]  }
  0x2d   :  { %v2018_v18 = vld [vmem:[#allocation2 + $0xc0] ss:$16 sps:$4 sm:$0xff]   ;;  %v2040_v40 = vld [vmem:[#allocation2 + $0x1c4] ss:$16 sps:$4 sm:$0xff]  }
  0x2e   :  { %1957 = vmatmul.mubr.msk.bf16.vlgmr.msra.gmra.mrb[0].mxu1 %vm62_vm2, %v42_v5  ;;  %v2019_v19 = vld [vmem:[#allocation2 + $0xe0] ss:$16 sps:$4 sm:$0xff]   ;;  %v2043_v42 = vld [vmem:[#allocation2 + $0x1e4] ss:$16 sps:$4 sm:$0xff]  }
  0x2f   :  { %1964 = vmatprep.mubr.msk.bf16.mxu1 %vm2313_vm0, %v2312_v0  ;;  %1961 = vmatpush3.bf16.msra.mxu1 %v2014_v6  ;;  %v2020_v28 = vld [vmem:[#allocation2 + $0x100] ss:$16 sps:$4 sm:$0xff]   ;;  %v2044_v45 = vld [vmem:[#allocation2 + $0x204] ss:$16 sps:$4 sm:$0xff]  }
  0x30   :  { %1962 = vmatprep.subr.bf16.mxu1 %v2312_v0  ;;  %v2023_v31 = vld [vmem:[#allocation2 + $0x120] ss:$16 sps:$4 sm:$0xff]   ;;  %v2050_v48 = vld [vmem:[#allocation2 + $0x224] ss:$16 sps:$4 sm:$0xff]   ;;  %825 = vmatprep.subr.bf16.mxu0 %v2044_v45  ;;  %v2124_v45 = vld [vmem:[#allocation2 + $0x3a8] ss:$16 sps:$4 sm:$0xff]  }
  0x31   :  { %v2026_v33 = vld [vmem:[#allocation2 + $0x140] ss:$16 sps:$4 sm:$0xff]   ;;  %v2056_v50 = vld [vmem:[#allocation2 + $0x244] ss:$16 sps:$4 sm:$0xff]  }
  0x32   :  { %v2029_v35 = vld [vmem:[#allocation2 + $0x160] ss:$16 sps:$4 sm:$0xff]   ;;  %v2062_v52 = vld [vmem:[#allocation2 + $0x264] ss:$16 sps:$4 sm:$0xff]  }
  0x33   :  { %1963 = vmatpush3.bf16.msra.mxu1 %v2015_v7  ;;  %v2032_v37 = vld [vmem:[#allocation2 + $0x180] ss:$16 sps:$4 sm:$0xff]   ;;  %v2068_v54 = vld [vmem:[#allocation2 + $0x284] ss:$16 sps:$4 sm:$0xff]  }
  0x34   :  { %1968 = vmatprep.subr.bf16.mxu1 %v2312_v0  ;;  %v2035_v39 = vld [vmem:[#allocation2 + $0x1a0] ss:$16 sps:$4 sm:$0xff]   ;;  %v2074_v56 = vld [vmem:[#allocation2 + $0x2a4] ss:$16 sps:$4 sm:$0xff]  }
  0x35   :  { %v2038_v41 = vld [vmem:[#allocation2 + $0x1c0] ss:$16 sps:$4 sm:$0xff]   ;;  %v2080_v58 = vld [vmem:[#allocation2 + $0x2c4] ss:$16 sps:$4 sm:$0xff]  }
  0x36   :  { %v2041_v43 = vld [vmem:[#allocation2 + $0x1e0] ss:$16 sps:$4 sm:$0xff]   ;;  %v2086_v60 = vld [vmem:[#allocation2 + $0x2e4] ss:$16 sps:$4 sm:$0xff]  }
  0x37   :  { %v2049_v47 = vld [vmem:[#allocation2 + $0x200] ss:$16 sps:$4 sm:$0xff]   ;;  %v2092_v62 = vld [vmem:[#allocation2 + $0x304] ss:$16 sps:$4 sm:$0xff]  }
  0x38   :  { %826 = vmatpush1.bf16.msra.mxu0 %v2049_v47  ;;  %v2055_v49 = vld [vmem:[#allocation2 + $0x220] ss:$16 sps:$4 sm:$0xff]   ;;  %v2098_v1 = vld [vmem:[#allocation2 + $0x324] ss:$16 sps:$4 sm:$0xff]   ;;  %v2132_v47 = vld [vmem:[#allocation2 + $0x3cc] ss:$16 sps:$4 sm:$0xff]  }
  0x39   :  { %827 = vmatprep.subr.bf16.mxu0 %v2050_v48  ;;  %v2061_v51 = vld [vmem:[#allocation2 + $0x240] ss:$16 sps:$4 sm:$0xff]   ;;  %v2104_v3 = vld [vmem:[#allocation2 + $0x344] ss:$16 sps:$4 sm:$0xff]   ;;  %v2130_v48 = vld [vmem:[#allocation2 + $0x3c8] ss:$16 sps:$4 sm:$0xff]  }
  0x3a   :  { %v2067_v53 = vld [vmem:[#allocation2 + $0x260] ss:$16 sps:$4 sm:$0xff]   ;;  %v2110_v5 = vld [vmem:[#allocation2 + $0x364] ss:$16 sps:$4 sm:$0xff]  }
  0x3b   :  { %v2073_v55 = vld [vmem:[#allocation2 + $0x280] ss:$16 sps:$4 sm:$0xff]   ;;  %v2116_v7 = vld [vmem:[#allocation2 + $0x384] ss:$16 sps:$4 sm:$0xff]  }
  0x3c   :  { %828 = vmatpush1.bf16.msra.mxu0 %v2055_v49  ;;  %v2079_v57 = vld [vmem:[#allocation2 + $0x2a0] ss:$16 sps:$4 sm:$0xff]  }
  0x3d   :  { %829 = vmatprep.subr.bf16.mxu0 %v2056_v50  ;;  %v2085_v59 = vld [vmem:[#allocation2 + $0x2c0] ss:$16 sps:$4 sm:$0xff]   ;;  %v2134_v50 = vld [vmem:[#allocation2 + $0x3e4] ss:$16 sps:$4 sm:$0xff]  }
  0x3e   :  { %v2091_v61 = vld [vmem:[#allocation2 + $0x2e0] ss:$16 sps:$4 sm:$0xff]  }
  0x3f   :  { %v2097_v63 = vld [vmem:[#allocation2 + $0x300] ss:$16 sps:$4 sm:$0xff]  }
  0x40   :  { %830 = vmatpush1.bf16.msra.mxu0 %v2061_v51  ;;  %v2103_v2 = vld [vmem:[#allocation2 + $0x320] ss:$16 sps:$4 sm:$0xff]   ;;  %v2138_v51 = vld [vmem:[#allocation2 + $0x3ec] ss:$16 sps:$4 sm:$0xff]  }
  0x41   :  { %831 = vmatprep.subr.bf16.mxu0 %v2062_v52  ;;  %v2109_v4 = vld [vmem:[#allocation2 + $0x340] ss:$16 sps:$4 sm:$0xff]   ;;  %v2136_v52 = vld [vmem:[#allocation2 + $0x3e8] ss:$16 sps:$4 sm:$0xff]  }
  0x42   :  { %v2115_v6 = vld [vmem:[#allocation2 + $0x360] ss:$16 sps:$4 sm:$0xff]  }
  0x43   :  { %v2133_v49 = vld [vmem:[#allocation2 + $0x3c0] ss:$16 sps:$4 sm:$0xff]  }
  0x44   :  { %832 = vmatpush1.bf16.msra.mxu0 %v2067_v53  ;;  %v2139_v53 = vld [vmem:[#allocation2 + $0x3e0] ss:$16 sps:$4 sm:$0xff]  }
  0x45   :  { %833 = vmatprep.subr.bf16.mxu0 %v2068_v54  ;;  %v2142_v54 = vld [vmem:[#allocation2 + $0x404] ss:$16 sps:$4 sm:$0xff]  }
  0x48   :  { %834 = vmatpush1.bf16.msra.mxu0 %v2073_v55  ;;  %v284_v55 = vlaneseq }
  0x49   :  { %835 = vmatprep.subr.bf16.mxu0 %v2074_v56 }
  0x4a   :  { %v2377_v56 = vshrl.u32 %v284_v55, 7 }
  0x4c   :  { %836 = vmatpush1.bf16.msra.mxu0 %v2079_v57  ;;  %v2380_v57 = vsub.s32 0, %v2377_v56 }
  0x4d   :  { %837 = vmatprep.subr.bf16.mxu0 %v2080_v58  ;;  %v282_v58 = vld [vmem:[#allocation4 + $0x3] sm:$0x3] }
  0x50   :  { %838 = vmatpush1.bf16.msra.mxu0 %v2085_v59  ;;  %v2383_v59 = vsub.s32 1, %v2377_v56 }
  0x51   :  { %839 = vmatprep.subr.bf16.mxu0 %v2086_v60  ;;  %v287_v60 = vrot.slane %v282_v58, %v2380_v57 }
  0x54   :  { %840 = vmatpush1.bf16.msra.mxu0 %v2091_v61  ;;  %v291_v61 = vrot.slane %v282_v58, %v2383_v59 }
  0x55   :  { %841 = vmatprep.subr.bf16.mxu0 %v2092_v62 }
  0x58   :  { %842 = vmatpush1.bf16.msra.mxu0 %v2097_v63 }
  0x59   :  { %843 = vmatprep.subr.bf16.mxu0 %v2098_v1 }
  0x5c   :  { %844 = vmatpush1.bf16.msra.mxu0 %v2103_v2 }
  0x5d   :  { %845 = vmatprep.subr.bf16.mxu0 %v2104_v3 }
  0x60   :  { %846 = vmatpush1.bf16.msra.mxu0 %v2109_v4 }
  0x61   :  { %847 = vmatprep.subr.bf16.mxu0 %v2110_v5 }
  0x64   :  { %848 = vmatpush1.bf16.msra.mxu0 %v2115_v6 }
  0x65   :  { %849 = vmatprep.subr.bf16.mxu0 %v2116_v7 }
 0x101   :  { %v104_v9 = vpop.f32.mrb[0].mxu1 }
 0x102   :  { %v105_v10 = vadd.f32 %v1730_v8, %v104_v9  ;;  %v1958_v11 = vpop.f32.mrb[1].mxu1  ;;  %v2121_v8 = vld [vmem:[#allocation2 + $0x380] ss:$16 sps:$4 sm:$0xff]   ;;  %v2122_v9 = vld [vmem:[#allocation2 + $0x3a4] ss:$16 sps:$4 sm:$0xff]  }
 0x103   :  { %v107_v12 = vpop.f32.mrb[2].mxu1  ;;  %850 = vmatpush1.bf16.msra.mxu0 %v2121_v8  ;;  %v1738_v11 = vld [vmem:[#allocation4 + $0x2] ss:$0 sm:$0xff] }
 0x104   :  { %v110_v13 = vmax.f32 %v105_v10, 0.0  ;;  %v1959_v14 = vpop.f32.mrb[3].mxu1  ;;  %v2127_v10 = vld [vmem:[#allocation2 + $0x3a0] ss:$16 sps:$4 sm:$0xff]   ;;  %851 = vmatprep.subr.bf16.mxu0 %v2122_v9 }
 0x105   :  { %v2140_v8 = vld [vmem:[#allocation2 + $0x400] ss:$16 sps:$4 sm:$0xff]  }
 0x106   :  { %v111_v16 = vpack.c.bf16 %v110_v13, %v110_v13 }
 0x107   :  { %852 = vmatpush1.bf16.msra.mxu0 %v2127_v10  ;;  %v2145_v10 = vld [vmem:[#allocation2 + $0x424] ss:$16 sps:$4 sm:$0xff]  }
 0x108   :  { %1965 = vmatmul.mubr.msk.bf16.vlgmr.msra.gmra.mrb[4].mxu1 %vm135_vm3, %v111_v16 }
 0x109   :  { %1969 = vmatpush3.bf16.msra.mxu1 %v2016_v15  ;;  %1976 = vmatprep.mubr.msk.bf16.mxu1 %vm2313_vm0, %v2312_v0 }
 0x10a   :  { %1970 = vmatprep.subr.bf16.mxu1 %v2312_v0 }
 0x10d   :  { %1971 = vmatpush3.bf16.msra.mxu1 %v2017_v17 }
 0x10e   :  { %1972 = vmatprep.subr.bf16.mxu1 %v2312_v0 }
 0x111   :  { %1973 = vmatpush3.bf16.msra.mxu1 %v2018_v18  ;;  %v2046_v18 = vld [vmem:[#allocation2 + $0x208] ss:$16 sps:$4 sm:$0xff]  }
 0x112   :  { %1974 = vmatprep.subr.bf16.mxu1 %v2312_v0 }
 0x115   :  { %1975 = vmatpush3.bf16.msra.mxu1 %v2019_v19 }
 0x116   :  { %374 = vmatprep.subr.bf16.mxu1 %v2022_v20  ;;  %v2054_v20 = vld [vmem:[#allocation2 + $0x22c] ss:$16 sps:$4 sm:$0xff]  }
 0x1db   :  { %v173_v22 = vpop.f32.mrb[4].mxu1 }
 0x1dc   :  { %v174_v23 = vadd.f32 %v1734_v21, %v173_v22  ;;  %v1966_v24 = vpop.f32.mrb[5].mxu1  ;;  %v2052_v21 = vld [vmem:[#allocation2 + $0x228] ss:$16 sps:$4 sm:$0xff]   ;;  %v2060_v22 = vld [vmem:[#allocation2 + $0x24c] ss:$16 sps:$4 sm:$0xff]  }
 0x1dd   :  { %v176_v25 = vpop.f32.mrb[6].mxu1  ;;  %v2066_v24 = vld [vmem:[#allocation2 + $0x26c] ss:$16 sps:$4 sm:$0xff]  }
 0x1de   :  { %v179_v26 = vmax.f32 %v174_v23, 0.0  ;;  %v1967_v27 = vpop.f32.mrb[7].mxu1  ;;  %v2058_v23 = vld [vmem:[#allocation2 + $0x248] ss:$16 sps:$4 sm:$0xff]  }
 0x1df   :  { %v2064_v25 = vld [vmem:[#allocation2 + $0x268] ss:$16 sps:$4 sm:$0xff]  }
 0x1e0   :  { %v180_v29 = vpack.c.bf16 %v179_v26, %v179_v26  ;;  %v2072_v26 = vld [vmem:[#allocation2 + $0x28c] ss:$16 sps:$4 sm:$0xff]   ;;  %v2070_v27 = vld [vmem:[#allocation2 + $0x288] ss:$16 sps:$4 sm:$0xff]  }
 0x1e2   :  { %1977 = vmatmul.mubr.msk.bf16.vlgmr.msra.gmra.mrb[8].mxu1 %vm220_vm4, %v180_v29  ;;  %v2076_v29 = vld [vmem:[#allocation2 + $0x2a8] ss:$16 sps:$4 sm:$0xff]  }
 0x1e3   :  { %375 = vmatpush1.bf16.msra.mxu1 %v2020_v28  ;;  %406 = vmatprep.mubr.bf16.mxu1 %v2314_v44  ;;  %v2078_v28 = vld [vmem:[#allocation2 + $0x2ac] ss:$16 sps:$4 sm:$0xff]  }
 0x1e4   :  { %376 = vmatprep.subr.bf16.mxu1 %v2025_v30  ;;  %v2084_v30 = vld [vmem:[#allocation2 + $0x2cc] ss:$16 sps:$4 sm:$0xff]  }
 0x1e5   :  { %v2126_v44 = vld [vmem:[#allocation2 + $0x3ac] ss:$16 sps:$4 sm:$0xff]  }
 0x1e7   :  { %377 = vmatpush1.bf16.msra.mxu1 %v2023_v31  ;;  %v2082_v31 = vld [vmem:[#allocation2 + $0x2c8] ss:$16 sps:$4 sm:$0xff]  }
 0x1e8   :  { %378 = vmatprep.subr.bf16.mxu1 %v2028_v32  ;;  %v2090_v32 = vld [vmem:[#allocation2 + $0x2ec] ss:$16 sps:$4 sm:$0xff]  }
 0x1eb   :  { %379 = vmatpush1.bf16.msra.mxu1 %v2026_v33  ;;  %v2088_v33 = vld [vmem:[#allocation2 + $0x2e8] ss:$16 sps:$4 sm:$0xff]  }
 0x1ec   :  { %380 = vmatprep.subr.bf16.mxu1 %v2031_v34  ;;  %v2096_v34 = vld [vmem:[#allocation2 + $0x30c] ss:$16 sps:$4 sm:$0xff]  }
 0x1ef   :  { %381 = vmatpush1.bf16.msra.mxu1 %v2029_v35  ;;  %v2094_v35 = vld [vmem:[#allocation2 + $0x308] ss:$16 sps:$4 sm:$0xff]  }
 0x1f0   :  { %382 = vmatprep.subr.bf16.mxu1 %v2034_v36  ;;  %v2102_v36 = vld [vmem:[#allocation2 + $0x32c] ss:$16 sps:$4 sm:$0xff]  }
 0x1f3   :  { %383 = vmatpush1.bf16.msra.mxu1 %v2032_v37  ;;  %v2100_v37 = vld [vmem:[#allocation2 + $0x328] ss:$16 sps:$4 sm:$0xff]  }
 0x1f4   :  { %384 = vmatprep.subr.bf16.mxu1 %v2037_v38  ;;  %v2108_v38 = vld [vmem:[#allocation2 + $0x34c] ss:$16 sps:$4 sm:$0xff]  }
 0x1f7   :  { %385 = vmatpush1.bf16.msra.mxu1 %v2035_v39  ;;  %v2106_v39 = vld [vmem:[#allocation2 + $0x348] ss:$16 sps:$4 sm:$0xff]  }
 0x1f8   :  { %386 = vmatprep.subr.bf16.mxu1 %v2040_v40  ;;  %v2114_v40 = vld [vmem:[#allocation2 + $0x36c] ss:$16 sps:$4 sm:$0xff]  }
 0x1fb   :  { %387 = vmatpush1.bf16.msra.mxu1 %v2038_v41  ;;  %v2112_v41 = vld [vmem:[#allocation2 + $0x368] ss:$16 sps:$4 sm:$0xff]  }
 0x1fc   :  { %388 = vmatprep.subr.bf16.mxu1 %v2043_v42  ;;  %v2120_v42 = vld [vmem:[#allocation2 + $0x38c] ss:$16 sps:$4 sm:$0xff]  }
 0x1ff   :  { %389 = vmatpush1.bf16.msra.mxu1 %v2041_v43  ;;  %v2118_v43 = vld [vmem:[#allocation2 + $0x388] ss:$16 sps:$4 sm:$0xff]  }
 0x200   :  { %866 = vmatprep.subr.bf16.mxu1 %v2048_v46  ;;  %v2128_v46 = vld [vmem:[#allocation2 + $0x3c4] ss:$16 sps:$4 sm:$0xff]  }
 0x201   :  { %853 = vmatprep.subr.bf16.mxu0 %v2128_v46  ;;  %v2241_v46 = vld [vmem:[#allocation2 + $0x840] ss:$16 sps:$4 sm:$0xff]  }
 0x202   :  { %854 = vmatpush1.bf16.msra.mxu0 %v2133_v49  ;;  %v2244_v49 = vld [vmem:[#allocation2 + $0x980] ss:$16 sps:$4 sm:$0xff]  }
 0x203   :  { %855 = vmatprep.subr.bf16.mxu0 %v2134_v50  ;;  %v2245_v50 = vld [vmem:[#allocation2 + $0x880] ss:$16 sps:$4 sm:$0xff]  }
 0x206   :  { %856 = vmatpush1.bf16.msra.mxu0 %v2139_v53  ;;  %v2387_v53 = vld [vmem:[#allocation4 + $0x5] sm:$0xf] }
 0x207   :  { %1311 = vmatprep.subr.bf16.mxu0 %v2142_v54  ;;  %v499_v54 = vsub.s32 3, %v2377_v56  ;;  %v488_v55 = vrot.slane %v2387_v53, %v2380_v57  ;;  %v492_v58 = vrot.slane %v2387_v53, %v2383_v59 }
 0x2b5   :  { %v258_v12 = vpop.f32.mrb[8].mxu1 }
 0x2b6   :  { %v259_v13 = vadd.f32 %v1738_v11, %v258_v12  ;;  %v1978_v14 = vpop.f32.mrb[9].mxu1  ;;  %v2143_v11 = vld [vmem:[#allocation2 + $0x420] ss:$16 sps:$4 sm:$0xff]   ;;  %v2148_v12 = vld [vmem:[#allocation2 + $0x444] ss:$16 sps:$4 sm:$0xff]  }
 0x2b7   :  { %v261_v15 = vpop.f32.mrb[10].mxu1  ;;  %v2151_v14 = vld [vmem:[#allocation2 + $0x464] ss:$16 sps:$4 sm:$0xff]  }
 0x2b8   :  { %v264_v16 = vmax.f32 %v259_v13, 0.0  ;;  %v1979_v17 = vpop.f32.mrb[11].mxu1  ;;  %v2146_v13 = vld [vmem:[#allocation2 + $0x440] ss:$16 sps:$4 sm:$0xff]  }
 0x2b9   :  { %v2149_v15 = vld [vmem:[#allocation2 + $0x460] ss:$16 sps:$4 sm:$0xff]  }
 0x2ba   :  { %v265_v19 = vpack.c.bf16 %v264_v16, %v264_v16  ;;  %v2154_v16 = vld [vmem:[#allocation2 + $0x484] ss:$16 sps:$4 sm:$0xff]   ;;  %v2152_v17 = vld [vmem:[#allocation2 + $0x480] ss:$16 sps:$4 sm:$0xff]  }
 0x2bc   :  { %407 = vmatmul.mubr.bf16.vlgmr.msra.gmra.mrb[12].mxu1 %v265_v19  ;;  %v2155_v19 = vld [vmem:[#allocation2 + $0x4a0] ss:$16 sps:$4 sm:$0xff]  }
 0x2bd   :  { %867 = vmatpush1.bf16.msra.mxu1 %v2046_v18  ;;  %v2157_v18 = vld [vmem:[#allocation2 + $0x4a4] ss:$16 sps:$4 sm:$0xff]  }
 0x2be   :  { %868 = vmatprep.subr.bf16.mxu1 %v2054_v20  ;;  %v2160_v20 = vld [vmem:[#allocation2 + $0x4c4] ss:$16 sps:$4 sm:$0xff]  }
 0x2c1   :  { %869 = vmatpush1.bf16.msra.mxu1 %v2052_v21  ;;  %v2158_v21 = vld [vmem:[#allocation2 + $0x4c0] ss:$16 sps:$4 sm:$0xff]  }
 0x2c2   :  { %870 = vmatprep.subr.bf16.mxu1 %v2060_v22  ;;  %v2163_v22 = vld [vmem:[#allocation2 + $0x4e4] ss:$16 sps:$4 sm:$0xff]  }
 0x2c5   :  { %871 = vmatpush1.bf16.msra.mxu1 %v2058_v23  ;;  %v2161_v23 = vld [vmem:[#allocation2 + $0x4e0] ss:$16 sps:$4 sm:$0xff]  }
 0x2c6   :  { %872 = vmatprep.subr.bf16.mxu1 %v2066_v24  ;;  %v2166_v24 = vld [vmem:[#allocation2 + $0x504] ss:$16 sps:$4 sm:$0xff]  }
 0x2c9   :  { %873 = vmatpush1.bf16.msra.mxu1 %v2064_v25  ;;  %v2164_v25 = vld [vmem:[#allocation2 + $0x500] ss:$16 sps:$4 sm:$0xff]  }
 0x2ca   :  { %874 = vmatprep.subr.bf16.mxu1 %v2072_v26  ;;  %v2169_v26 = vld [vmem:[#allocation2 + $0x524] ss:$16 sps:$4 sm:$0xff]  }
 0x2cd   :  { %875 = vmatpush1.bf16.msra.mxu1 %v2070_v27  ;;  %v2167_v27 = vld [vmem:[#allocation2 + $0x520] ss:$16 sps:$4 sm:$0xff]  }
 0x2ce   :  { %876 = vmatprep.subr.bf16.mxu1 %v2078_v28  ;;  %v2172_v28 = vld [vmem:[#allocation2 + $0x544] ss:$16 sps:$4 sm:$0xff]  }
 0x2d1   :  { %877 = vmatpush1.bf16.msra.mxu1 %v2076_v29  ;;  %v2170_v29 = vld [vmem:[#allocation2 + $0x540] ss:$16 sps:$4 sm:$0xff]  }
 0x2d2   :  { %878 = vmatprep.subr.bf16.mxu1 %v2084_v30  ;;  %v2175_v30 = vld [vmem:[#allocation2 + $0x564] ss:$16 sps:$4 sm:$0xff]  }
 0x2d5   :  { %879 = vmatpush1.bf16.msra.mxu1 %v2082_v31  ;;  %v2173_v31 = vld [vmem:[#allocation2 + $0x560] ss:$16 sps:$4 sm:$0xff]  }
 0x2d6   :  { %880 = vmatprep.subr.bf16.mxu1 %v2090_v32  ;;  %v2178_v32 = vld [vmem:[#allocation2 + $0x584] ss:$16 sps:$4 sm:$0xff]  }
 0x2d9   :  { %881 = vmatpush1.bf16.msra.mxu1 %v2088_v33  ;;  %v2176_v33 = vld [vmem:[#allocation2 + $0x580] ss:$16 sps:$4 sm:$0xff]  }
 0x2da   :  { %882 = vmatprep.subr.bf16.mxu1 %v2096_v34  ;;  %v2181_v34 = vld [vmem:[#allocation2 + $0x5a4] ss:$16 sps:$4 sm:$0xff]  }
 0x2dd   :  { %883 = vmatpush1.bf16.msra.mxu1 %v2094_v35  ;;  %v2179_v35 = vld [vmem:[#allocation2 + $0x5a0] ss:$16 sps:$4 sm:$0xff]  }
 0x2de   :  { %884 = vmatprep.subr.bf16.mxu1 %v2102_v36  ;;  %v2184_v36 = vld [vmem:[#allocation2 + $0x5c4] ss:$16 sps:$4 sm:$0xff]  }
 0x2e1   :  { %885 = vmatpush1.bf16.msra.mxu1 %v2100_v37  ;;  %v2182_v37 = vld [vmem:[#allocation2 + $0x5c0] ss:$16 sps:$4 sm:$0xff]  }
 0x2e2   :  { %886 = vmatprep.subr.bf16.mxu1 %v2108_v38  ;;  %v2187_v38 = vld [vmem:[#allocation2 + $0x5e4] ss:$16 sps:$4 sm:$0xff]  }
 0x2e5   :  { %887 = vmatpush1.bf16.msra.mxu1 %v2106_v39  ;;  %v2185_v39 = vld [vmem:[#allocation2 + $0x5e0] ss:$16 sps:$4 sm:$0xff]  }
 0x2e6   :  { %888 = vmatprep.subr.bf16.mxu1 %v2114_v40  ;;  %v2190_v40 = vld [vmem:[#allocation2 + $0x604] ss:$16 sps:$4 sm:$0xff]  }
 0x2e9   :  { %889 = vmatpush1.bf16.msra.mxu1 %v2112_v41  ;;  %v2236_v41 = vld [vmem:[#allocation2 + $0x900] ss:$16 sps:$4 sm:$0xff]  }
 0x2ea   :  { %890 = vmatprep.subr.bf16.mxu1 %v2120_v42  ;;  %v2237_v42 = vld [vmem:[#allocation2 + $0x800] ss:$16 sps:$4 sm:$0xff]  }
 0x2ed   :  { %891 = vmatpush1.bf16.msra.mxu1 %v2118_v43  ;;  %v2238_v43 = vld [vmem:[#allocation2 + $0x920] ss:$16 sps:$4 sm:$0xff]  }
 0x2ee   :  { %892 = vmatprep.subr.bf16.mxu1 %v2126_v44  ;;  %v2239_v44 = vld [vmem:[#allocation2 + $0x820] ss:$16 sps:$4 sm:$0xff]  }
 0x2f1   :  { %893 = vmatpush1.bf16.msra.mxu1 %v2124_v45  ;;  %v2240_v45 = vld [vmem:[#allocation2 + $0x940] ss:$16 sps:$4 sm:$0xff]  }
 0x2f2   :  { %894 = vmatprep.subr.bf16.mxu1 %v2132_v47  ;;  %v2242_v47 = vld [vmem:[#allocation2 + $0x960] ss:$16 sps:$4 sm:$0xff]  }
 0x2f5   :  { %895 = vmatpush1.bf16.msra.mxu1 %v2130_v48  ;;  %v2243_v48 = vld [vmem:[#allocation2 + $0x860] ss:$16 sps:$4 sm:$0xff]  }
 0x2f6   :  { %896 = vmatprep.subr.bf16.mxu1 %v2138_v51  ;;  %v2246_v51 = vld [vmem:[#allocation2 + $0x9a0] ss:$16 sps:$4 sm:$0xff]  }
 0x2f9   :  { %897 = vmatpush1.bf16.msra.mxu1 %v2136_v52  ;;  %v2247_v52 = vld [vmem:[#allocation2 + $0x8a0] ss:$16 sps:$4 sm:$0xff]  }
 0x2fa   :  { %1923 = vmatprep.subr.bf16.mxu1 %v2236_v41  ;;  %v2229_v41 = vld [vmem:[#allocation2 + $0x7a4] ss:$16 sps:$4 sm:$0xff]  }
 0x38f   :  { %v408_v62 = vpop.f32.mrb[12].mxu1 }
 0x390   :  { %v409_v63 = vadd.f32 %v408_v62, %v287_v60  ;;  %v410_v1 = vpop.f32.mrb[13].mxu1  ;;  %v500_v60 = vrot.slane %v2387_v53, %v499_v54  ;;  %v979_v54 = vld [vmem:[#allocation4 + $0x9] sm:$0x3] }
 0x391   :  { %v411_v2 = vadd.f32 %v410_v1, %v291_v61  ;;  %v412_v3 = vpop.f32.mrb[14].mxu1 }
 0x392   :  { %v415_v4 = vmax.f32 %v409_v63, 0.0  ;;  %v413_v5 = vpop.f32.mrb[15].mxu1 }
 0x393   :  { %v416_v6 = vmax.f32 %v411_v2, 0.0 }
 0x394   :  { %v417_v9 = vpack.c.bf16 %v415_v4, %v415_v4 }
 0x395   :  { %v418_v7 = vpack.c.bf16 %v416_v6, %v416_v6 }
 0x397   :  { %857 = vmatprep.mubr.bf16.mxu0 %v418_v7  ;;  %898 = vmatprep.mubr.bf16.mxu1 %v418_v7 }
 0x398   :  { %858 = vmatmul.mubr.bf16.vlgmr.msra.gmra.mrb[0].mxu0 %v417_v9  ;;  %899 = vmatmul.mubr.bf16.vlgmr.msra.gmra.mrb[16].mxu1 %v417_v9 }
 0x399   :  { %1312 = vmatpush1.bf16.msra.mxu0 %v2140_v8  ;;  %1924 = vmatpush3.bf16.msra.mxu1 %v2237_v42  ;;  %v2227_v42 = vld [vmem:[#allocation2 + $0x7a0] ss:$16 sps:$4 sm:$0xff]  }
 0x39a   :  { %1313 = vmatprep.subr.bf16.mxu0 %v2145_v10  ;;  %1925 = vmatprep.subr.bf16.mxu1 %v2238_v43 }
 0x39d   :  { %1314 = vmatpush1.bf16.msra.mxu0 %v2143_v11  ;;  %1926 = vmatpush3.bf16.msra.mxu1 %v2239_v44  ;;  %v2232_v44 = vld [vmem:[#allocation2 + $0x7c4] ss:$16 sps:$4 sm:$0xff]  }
 0x39e   :  { %1315 = vmatprep.subr.bf16.mxu0 %v2148_v12  ;;  %1927 = vmatprep.subr.bf16.mxu1 %v2240_v45  ;;  %v2230_v45 = vld [vmem:[#allocation2 + $0x7c0] ss:$16 sps:$4 sm:$0xff]  }
 0x3a1   :  { %1316 = vmatpush1.bf16.msra.mxu0 %v2146_v13  ;;  %1928 = vmatpush3.bf16.msra.mxu1 %v2241_v46  ;;  %v2188_v13 = vld [vmem:[#allocation2 + $0x600] ss:$16 sps:$4 sm:$0xff]  }
 0x3a2   :  { %1317 = vmatprep.subr.bf16.mxu0 %v2151_v14  ;;  %1929 = vmatprep.subr.bf16.mxu1 %v2242_v47  ;;  %v2235_v47 = vld [vmem:[#allocation2 + $0x7e4] ss:$16 sps:$4 sm:$0xff]  }
 0x3a5   :  { %1318 = vmatpush1.bf16.msra.mxu0 %v2149_v15  ;;  %1930 = vmatpush3.bf16.msra.mxu1 %v2243_v48  ;;  %v2193_v15 = vld [vmem:[#allocation2 + $0x624] ss:$16 sps:$4 sm:$0xff]   ;;  %v2233_v48 = vld [vmem:[#allocation2 + $0x7e0] ss:$16 sps:$4 sm:$0xff]  }
 0x3a6   :  { %1319 = vmatprep.subr.bf16.mxu0 %v2154_v16  ;;  %1931 = vmatprep.subr.bf16.mxu1 %v2244_v49 }
 0x3a9   :  { %1320 = vmatpush1.bf16.msra.mxu0 %v2152_v17  ;;  %1932 = vmatpush3.bf16.msra.mxu1 %v2245_v50  ;;  %v2191_v17 = vld [vmem:[#allocation2 + $0x620] ss:$16 sps:$4 sm:$0xff]  }
 0x3aa   :  { %1321 = vmatprep.subr.bf16.mxu0 %v2157_v18  ;;  %1933 = vmatprep.subr.bf16.mxu1 %v2246_v51  ;;  %v2196_v18 = vld [vmem:[#allocation2 + $0x644] ss:$16 sps:$4 sm:$0xff]   ;;  %v2248_v50 = vld [vmem:[#allocation2 + $0x9c0] ss:$16 sps:$4 sm:$0xff]  }
 0x3ab   :  { %v2249_v51 = vld [vmem:[#allocation2 + $0x8c0] ss:$16 sps:$4 sm:$0xff]  }
 0x3ad   :  { %1322 = vmatpush1.bf16.msra.mxu0 %v2155_v19  ;;  %1934 = vmatpush3.bf16.msra.mxu1 %v2247_v52  ;;  %v2194_v19 = vld [vmem:[#allocation2 + $0x640] ss:$16 sps:$4 sm:$0xff]  }
 0x3ae   :  { %1323 = vmatprep.subr.bf16.mxu0 %v2160_v20  ;;  %v2199_v20 = vld [vmem:[#allocation2 + $0x664] ss:$16 sps:$4 sm:$0xff]   ;;  %1935 = vmatprep.subr.bf16.mxu1 %v2248_v50  ;;  %v2250_v52 = vld [vmem:[#allocation2 + $0x9e0] ss:$16 sps:$4 sm:$0xff]  }
 0x3b1   :  { %1324 = vmatpush1.bf16.msra.mxu0 %v2158_v21  ;;  %v2197_v21 = vld [vmem:[#allocation2 + $0x660] ss:$16 sps:$4 sm:$0xff]   ;;  %1936 = vmatpush3.bf16.msra.mxu1 %v2249_v51 }
 0x3b2   :  { %1325 = vmatprep.subr.bf16.mxu0 %v2163_v22  ;;  %v2202_v22 = vld [vmem:[#allocation2 + $0x684] ss:$16 sps:$4 sm:$0xff]   ;;  %1937 = vmatprep.subr.bf16.mxu1 %v2250_v52 }
 0x3b5   :  { %1326 = vmatpush1.bf16.msra.mxu0 %v2161_v23  ;;  %v2200_v23 = vld [vmem:[#allocation2 + $0x680] ss:$16 sps:$4 sm:$0xff]  }
 0x3b6   :  { %1327 = vmatprep.subr.bf16.mxu0 %v2166_v24  ;;  %v2205_v24 = vld [vmem:[#allocation2 + $0x6a4] ss:$16 sps:$4 sm:$0xff]  }
 0x3b9   :  { %1328 = vmatpush1.bf16.msra.mxu0 %v2164_v25  ;;  %v2203_v25 = vld [vmem:[#allocation2 + $0x6a0] ss:$16 sps:$4 sm:$0xff]  }
 0x3ba   :  { %1329 = vmatprep.subr.bf16.mxu0 %v2169_v26  ;;  %v2208_v26 = vld [vmem:[#allocation2 + $0x6c4] ss:$16 sps:$4 sm:$0xff]  }
 0x3bd   :  { %1330 = vmatpush1.bf16.msra.mxu0 %v2167_v27  ;;  %v2206_v27 = vld [vmem:[#allocation2 + $0x6c0] ss:$16 sps:$4 sm:$0xff]  }
 0x3be   :  { %1331 = vmatprep.subr.bf16.mxu0 %v2172_v28  ;;  %v2211_v28 = vld [vmem:[#allocation2 + $0x6e4] ss:$16 sps:$4 sm:$0xff]  }
 0x3c1   :  { %1332 = vmatpush1.bf16.msra.mxu0 %v2170_v29  ;;  %v2209_v29 = vld [vmem:[#allocation2 + $0x6e0] ss:$16 sps:$4 sm:$0xff]  }
 0x3c2   :  { %1333 = vmatprep.subr.bf16.mxu0 %v2175_v30  ;;  %v2214_v30 = vld [vmem:[#allocation2 + $0x704] ss:$16 sps:$4 sm:$0xff]  }
 0x3c5   :  { %1334 = vmatpush1.bf16.msra.mxu0 %v2173_v31  ;;  %v2212_v31 = vld [vmem:[#allocation2 + $0x700] ss:$16 sps:$4 sm:$0xff]  }
 0x3c6   :  { %1335 = vmatprep.subr.bf16.mxu0 %v2178_v32  ;;  %v2217_v32 = vld [vmem:[#allocation2 + $0x724] ss:$16 sps:$4 sm:$0xff]  }
 0x3c9   :  { %1336 = vmatpush1.bf16.msra.mxu0 %v2176_v33  ;;  %v2215_v33 = vld [vmem:[#allocation2 + $0x720] ss:$16 sps:$4 sm:$0xff]  }
 0x3ca   :  { %1337 = vmatprep.subr.bf16.mxu0 %v2181_v34  ;;  %v2220_v34 = vld [vmem:[#allocation2 + $0x744] ss:$16 sps:$4 sm:$0xff]  }
 0x3cd   :  { %1338 = vmatpush1.bf16.msra.mxu0 %v2179_v35  ;;  %v2218_v35 = vld [vmem:[#allocation2 + $0x740] ss:$16 sps:$4 sm:$0xff]  }
 0x3ce   :  { %1339 = vmatprep.subr.bf16.mxu0 %v2184_v36  ;;  %v2223_v36 = vld [vmem:[#allocation2 + $0x764] ss:$16 sps:$4 sm:$0xff]  }
 0x3d1   :  { %1340 = vmatpush1.bf16.msra.mxu0 %v2182_v37  ;;  %v2221_v37 = vld [vmem:[#allocation2 + $0x760] ss:$16 sps:$4 sm:$0xff]  }
 0x3d2   :  { %1341 = vmatprep.subr.bf16.mxu0 %v2187_v38  ;;  %v2226_v38 = vld [vmem:[#allocation2 + $0x784] ss:$16 sps:$4 sm:$0xff]  }
 0x3d5   :  { %1342 = vmatpush1.bf16.msra.mxu0 %v2185_v39  ;;  %v2224_v39 = vld [vmem:[#allocation2 + $0x780] ss:$16 sps:$4 sm:$0xff]  }
 0x3d6   :  { %1352 = vmatprep.subr.bf16.mxu0 %v2190_v40  ;;  %v495_v40 = vsub.s32 2, %v2377_v56 }
 0x3d8   :  { %v496_v43 = vrot.slane %v2387_v53, %v495_v40  ;;  %v2251_v53 = vld [vmem:[#allocation2 + $0x8e0] ss:$16 sps:$4 sm:$0xff]  }
 0x3d9   :  { %1938 = vmatpush3.bf16.msra.mxu1 %v2251_v53 }
 0x3da   :  { %1980 = vmatprep.subr.bf16.mxu1 %v2312_v0 }
 0x46b   :  { %v859_v61 = vpop.f32.mrb[0].mxu0  ;;  %v2395_v62 = vpop.f32.mrb[16].mxu1 }
 0x46c   :  { %v860_v63 = vadd.f32 %v859_v61, %v488_v55  ;;  %v861_v1 = vpop.f32.mrb[1].mxu0  ;;  %v902_v2 = vpop.f32.mrb[17].mxu1  ;;  %v901_v46 = vadd.f32 %v2395_v62, %v496_v43  ;;  %v984_v55 = vrot.slane %v979_v54, %v2380_v57 }
 0x46d   :  { %v862_v3 = vadd.f32 %v861_v1, %v492_v58  ;;  %v903_v4 = vadd.f32 %v902_v2, %v500_v60  ;;  %v863_v5 = vpop.f32.mrb[2].mxu0  ;;  %v904_v6 = vpop.f32.mrb[18].mxu1  ;;  %v988_v58 = vrot.slane %v979_v54, %v2383_v59  ;;  %v2254_v59 = vld [vmem:[#allocation2 + $0xa40] ss:$16 sps:$4 sm:$0xff]  }
 0x46e   :  { %v907_v7 = vmax.f32 %v860_v63, 0.0  ;;  %v864_v8 = vpop.f32.mrb[3].mxu0  ;;  %v905_v9 = vpop.f32.mrb[19].mxu1  ;;  %v909_v49 = vmax.f32 %v901_v46, 0.0  ;;  %v2252_v6 = vld [vmem:[#allocation2 + $0xa00] ss:$16 sps:$4 sm:$0xff]  }
 0x46f   :  { %v908_v10 = vmax.f32 %v862_v3, 0.0  ;;  %v910_v11 = vmax.f32 %v903_v4, 0.0  ;;  %v2253_v8 = vld [vmem:[#allocation2 + $0xa20] ss:$16 sps:$4 sm:$0xff]  }
 0x470   :  { %v911_v14 = vpack.c.bf16 %v907_v7, %v907_v7  ;;  %v913_v56 = vpack.c.bf16 %v909_v49, %v909_v49  ;;  %v2255_v9 = vld [vmem:[#allocation2 + $0xa60] ss:$16 sps:$4 sm:$0xff]  }
 0x471   :  { %v912_v12 = vpack.c.bf16 %v908_v10, %v908_v10  ;;  %v914_v16 = vpack.c.bf16 %v910_v11, %v910_v11  ;;  %v1888_v11 = vld [vmem:[#allocation4 + $0xb] ss:$0 sm:$0xff] }
 0x473   :  { %1343 = vmatprep.mubr.bf16.mxu0 %v912_v12 }
 0x474   :  { %1344 = vmatmul.mubr.bf16.vlgmr.msra.gmra.mrb[4].mxu0 %v911_v14 }
 0x475   :  { %1353 = vmatpush1.bf16.msra.mxu0 %v2188_v13  ;;  %1384 = vmatprep.mubr.bf16.mxu0 %v914_v16 }
 0x476   :  { %1354 = vmatprep.subr.bf16.mxu0 %v2193_v15 }
 0x479   :  { %1355 = vmatpush1.bf16.msra.mxu0 %v2191_v17 }
 0x47a   :  { %1356 = vmatprep.subr.bf16.mxu0 %v2196_v18 }
 0x47d   :  { %1357 = vmatpush1.bf16.msra.mxu0 %v2194_v19  ;;  %v1659_v19 = vld [vmem:[#allocation4 + $0xd] sm:$0x1] }
 0x47e   :  { %1358 = vmatprep.subr.bf16.mxu0 %v2199_v20  ;;  %1662 = vperm.xlu0 %2011, %v1659_v19   ;;  %v1905_v20 = vld [vmem:[#allocation4 + $0xc] ss:$0 sm:$0xff] }
 0x481   :  { %1359 = vmatpush1.bf16.msra.mxu0 %v2197_v21 }
 0x482   :  { %1360 = vmatprep.subr.bf16.mxu0 %v2202_v22 }
 0x485   :  { %1361 = vmatpush1.bf16.msra.mxu0 %v2200_v23 }
 0x486   :  { %1362 = vmatprep.subr.bf16.mxu0 %v2205_v24 }
 0x489   :  { %1363 = vmatpush1.bf16.msra.mxu0 %v2203_v25 }
 0x48a   :  { %1364 = vmatprep.subr.bf16.mxu0 %v2208_v26 }
 0x48d   :  { %1365 = vmatpush1.bf16.msra.mxu0 %v2206_v27 }
 0x48e   :  { %1366 = vmatprep.subr.bf16.mxu0 %v2211_v28 }
 0x491   :  { %1367 = vmatpush1.bf16.msra.mxu0 %v2209_v29  ;;  %v1658_v29 = vld [vmem:[#allocation2 + $0xa80] sm:$0x1] }
 0x492   :  { %1368 = vmatprep.subr.bf16.mxu0 %v2214_v30 }
 0x495   :  { %1369 = vmatpush1.bf16.msra.mxu0 %v2212_v31 }
 0x496   :  { %1370 = vmatprep.subr.bf16.mxu0 %v2217_v32 }
 0x499   :  { %1371 = vmatpush1.bf16.msra.mxu0 %v2215_v33 }
 0x49a   :  { %1372 = vmatprep.subr.bf16.mxu0 %v2220_v34 }
 0x49d   :  { %1373 = vmatpush1.bf16.msra.mxu0 %v2218_v35 }
 0x49e   :  { %1374 = vmatprep.subr.bf16.mxu0 %v2223_v36 }
 0x4a1   :  { %1375 = vmatpush1.bf16.msra.mxu0 %v2221_v37 }
 0x4a2   :  { %1376 = vmatprep.subr.bf16.mxu0 %v2226_v38 }
 0x4a5   :  { %1377 = vmatpush1.bf16.msra.mxu0 %v2224_v39 }
 0x4a6   :  { %1378 = vmatprep.subr.bf16.mxu0 %v2229_v41 }
 0x4a9   :  { %1379 = vmatpush1.bf16.msra.mxu0 %v2227_v42 }
 0x4aa   :  { %1380 = vmatprep.subr.bf16.mxu0 %v2232_v44 }
 0x4ad   :  { %1381 = vmatpush1.bf16.msra.mxu0 %v2230_v45 }
 0x4ae   :  { %1382 = vmatprep.subr.bf16.mxu0 %v2235_v47 }
 0x4b1   :  { %1383 = vmatpush1.bf16.msra.mxu0 %v2233_v48 }
 0x4b4   :  { %1385 = vmatmul.mubr.bf16.vlgmr.msra.gmra.mrb[4].mxu0 %v913_v56 }
 0x4fd   :  { %v1663_v30 = vpop.permute.xlu0 %1662 }
 0x4fe   :  { %v1668_v31 = vrot.slane %v1663_v30, %v2380_v57 }
 0x587   :  { %v1386_v60 = vpop.f32.mrb[4].mxu0 }
 0x588   :  { %v1998_v61 = vadd.f32 %v1386_v60, %v984_v55  ;;  %v1388_v62 = vpop.f32.mrb[5].mxu0 }
 0x589   :  { %v1999_v63 = vadd.f32 %v1388_v62, %v988_v58  ;;  %v1390_v1 = vpop.f32.mrb[6].mxu0 }
 0x58a   :  { %v1393_v2 = vmax.f32 %v1998_v61, 0.0  ;;  %v1391_v3 = vpop.f32.mrb[7].mxu0 }
 0x58b   :  { %v1394_v4 = vmax.f32 %v1999_v63, 0.0 }
 0x58c   :  { %v1395_v7 = vpack.c.bf16 %v1393_v2, %v1393_v2 }
 0x58d   :  { %v1396_v5 = vpack.c.bf16 %v1394_v4, %v1394_v4 }
 0x58f   :  { %1564 = vmatprep.mubr.bf16.mxu1 %v1396_v5 }
 0x590   :  { %1565 = vmatmul.mubr.bf16.vlgmr.msra.gmra.mrb[20].mxu1 %v1395_v7 }
 0x591   :  { %1981 = vmatpush3.bf16.msra.mxu1 %v2252_v6  ;;  %1988 = vmatprep.mubr.msk.bf16.mxu1 %vm2313_vm0, %v2312_v0 }
 0x592   :  { %1982 = vmatprep.subr.bf16.mxu1 %v2312_v0 }
 0x595   :  { %1983 = vmatpush3.bf16.msra.mxu1 %v2253_v8 }
 0x596   :  { %1984 = vmatprep.subr.bf16.mxu1 %v2312_v0 }
 0x599   :  { %1985 = vmatpush3.bf16.msra.mxu1 %v2254_v59 }
 0x59a   :  { %1986 = vmatprep.subr.bf16.mxu1 %v2312_v0 }
 0x59d   :  { %1987 = vmatpush3.bf16.msra.mxu1 %v2255_v9 }
 0x59e   :  { %1992 = vmatprep.subr.bf16.mxu1 %v2312_v0 }
 0x663   :  { %v1939_v10 = vpop.f32.mrb[20].mxu1 }
 0x664   :  { %v1940_v12 = vpop.f32.mrb[21].mxu1 }
 0x665   :  { %v1941_v13 = vadd.f32 %v1940_v12, %v1939_v10  ;;  %v1942_v14 = vpop.f32.mrb[22].mxu1 }
 0x666   :  { %v1943_v15 = vpop.f32.mrb[23].mxu1 }
 0x667   :  { %v1567_v16 = vadd.f32 %v1941_v13, %v1888_v11 }
 0x669   :  { %v1572_v17 = vmax.f32 %v1567_v16, 0.0 }
 0x66b   :  { %v1573_v18 = vpack.c.bf16 %v1572_v17, %v1572_v17 }
 0x66d   :  { %1989 = vmatmul.mubr.msk.bf16.vlgmr.msra.gmra.mrb[24].mxu1 %vm220_vm4, %v1573_v18 }
 0x66e   :  { %1994 = vmatprep.mubr.msk.bf16.mxu1 %vm2313_vm0, %v2312_v0 }
 0x740   :  { %v1650_v21 = vpop.f32.mrb[24].mxu1 }
 0x741   :  { %v1651_v22 = vadd.f32 %v1905_v20, %v1650_v21  ;;  %v1990_v23 = vpop.f32.mrb[25].mxu1 }
 0x742   :  { %v1653_v24 = vpop.f32.mrb[26].mxu1 }
 0x743   :  { %v1656_v25 = vmax.f32 %v1651_v22, 0.0  ;;  %v1991_v26 = vpop.f32.mrb[27].mxu1 }
 0x745   :  { %v1657_v27 = vpack.c.bf16 %v1656_v25, %v1656_v25 }
 0x747   :  { %v1674_v28 = vsel %vm1669_vm5, %v1657_v27, 0 }
 0x748   :  { %1993 = vmatpush3.bf16.xpose.msra.mxu1 %v1674_v28 }
 0x74f   :  { %1995 = vmatmul.mubr.msk.bf16.vlgmr.msra.gmra.mrb[28].mxu1 %vm1669_vm5, %v1658_v29 }
 0x822   :  { %v1710_v32 = vpop.f32.mrb[28].mxu1 }
 0x823   :  { %v1711_v0 = vadd.f32 %v1710_v32, %v1668_v31  ;;  %v1996_v33 = vpop.f32.mrb[29].mxu1 }
 0x824   :  { %v1713_v34 = vpop.f32.mrb[30].mxu1 }
 0x825   :  { %v1716_v35 = vsub.f32 0.0, %v1711_v0  ;;  %v1997_v36 = vpop.f32.mrb[31].mxu1 }
 0x827   :  { %v1717_v37 = vmul.f32 1.442695, %v1716_v35 }
 0x829   :  { %2256 = vpow2.f32 %v1717_v37 }
 0x833   :  { %v2257_v38 = vpop.eup %2256 }
 0x834   :  { %v1719_v39 = vadd.f32 1.0, %v2257_v38 }
 0x836   :  { %2258 = vrcp.f32 %v1719_v39 }
 0x840   :  { %v2259_v40 = vpop.eup %2258 }
 0x841   :  { %1723 = vst.msk [vmem:[%s2419_s3] sm:$0x1] %vm1722_vm6, %v2259_v40 }
 0x842   :  { %1728 = vsyncpa [#allocation3], 1 }
 0x843   :  { %1729 = vsyncpa [#allocation5], 1 }

</bundles_post_ra>
